<compile_context>
chip_gen: v7x
topology: tpu7x:2x2x1
jax: 0.10.0
libtpu: 0.0.40
codegen_flags: <defaults>
</compile_context>

<pallas_src>
import jax
import jax.numpy as jnp
from jax import lax
from jax.experimental import pallas as pl
from jax.experimental.pallas import tpu as pltpu


# ---------------------------------------------------------------------------
# Kernel
# ---------------------------------------------------------------------------
def sgs_kernel(x_ref, w_ref, o_ref):
    # x_ref: (b_tile, C_in, t_hw)   channel-major activation tile (spatial on lanes)
    # w_ref: (C_out, C_in)          fused dense block-diagonal weight (W1+W2+W3)
    # o_ref: (b_tile, C_out, t_hw)
    w = w_ref[...]
    for b in range(x_ref.shape[0]):  # small static unroll (b_tile <= 16)
        o_ref[b] = jnp.dot(
            w, x_ref[b], preferred_element_type=jnp.float32
        ).astype(o_ref.dtype)


# ---------------------------------------------------------------------------
# Weight fusion (wrapper-side glue; tiny C_out x C_in work)
# ---------------------------------------------------------------------------
def _expand_grouped_weight(w_grouped, in_channel, groups):
    """(C_out, C_in//G, 1, 1) grouped conv weight -> dense f32 (C_out, C_in)."""
    out_channel = w_grouped.shape[0]
    c_in_g = in_channel // groups
    c_out_g = out_channel // groups
    wg = w_grouped[..., 0, 0].astype(jnp.float32)   # (C_out, C_in//G)
    w = jnp.zeros((out_channel, in_channel), dtype=jnp.float32)
    for g in range(groups):
        w = w.at[g * c_out_g:(g + 1) * c_out_g,
                 g * c_in_g:(g + 1) * c_in_g].set(
            wg[g * c_out_g:(g + 1) * c_out_g])
    return w


# ---------------------------------------------------------------------------
# Tiling heuristics
# ---------------------------------------------------------------------------
_MAX_T_HW = 131072            # columns; upper cap from the perf review
_MAX_B_TILE = 16              # cap static unroll in the kernel
_MIN_STEP_BYTES_FOR_SPLIT = 512 * 1024   # don't split grid below this per step


def _largest_divisor_le(n, cap):
    cap = max(1, min(n, cap))
    for d in range(cap, 0, -1):
        if n % d == 0:
            return d
    return 1


def _vmem_limits():
    """(vmem_limit_bytes, per-step double-buffered tile budget)."""
    try:
        info = pltpu.get_tpu_info()
        vmem_phys = int(getattr(info, "vmem_capacity_bytes", 64 * 1024 * 1024))
    except Exception:
        vmem_phys = 64 * 1024 * 1024   # conservative fallback (v7x physical)
    # Raise the scoped limit explicitly but stay well under physical VMEM
    # (v7x: ~48 MiB of 64 MiB; v5e/v6e: 96 MiB of 128 MiB).
    vmem_limit = min((vmem_phys * 3) // 4, 96 * 1024 * 1024)
    tile_budget = vmem_limit // 2        # headroom for weight + compiler scratch
    return vmem_limit, tile_budget


def _pick_tiling(B, C_in, C_out, HW, itemsize, tile_budget):
    """Pick (b_tile, t_hw, n_b, n_s) for grid=(n_b, n_s)."""
    bytes_per_col = (C_in + C_out) * itemsize          # one (batch-row, column)

    # Largest spatial tile (b_tile=1) fitting the double-buffered budget.
    max_cols = tile_budget // (2 * bytes_per_col)
    max_cols = max(128, (max_cols // 128) * 128)
    max_cols = min(max_cols, _MAX_T_HW)

    if HW <= max_cols:
        # Whole spatial extent in one block (legal for any HW, incl. HW%128!=0);
        # enlarge the per-step DMA by blocking over batch (contiguous slab).
        t_hw = HW
        n_s = 1
        b_cap = max(1, tile_budget // (2 * bytes_per_col * max(t_hw, 1)))
        b_cap = min(b_cap, B, _MAX_B_TILE)
        b_tile = _largest_divisor_le(B, b_cap)
    else:
        # Large feature map: lane-dense 128-multiple tiles, ragged tail via cdiv.
        t_hw = max_cols
        b_tile = 1
        n_s = pl.cdiv(HW, t_hw)
    n_b = B // b_tile

    # Keep >= 2 grid steps (both v7x TensorCores fed) unless that would shrink
    # the per-step DMA into overhead-dominated territory.
    step_bytes = b_tile * (C_in + C_out) * t_hw * itemsize
    if n_b * n_s < 2 and step_bytes // 2 >= _MIN_STEP_BYTES_FOR_SPLIT:
        if b_tile > 1:
            b_tile = _largest_divisor_le(B, b_tile // 2)
            n_b = B // b_tile
        elif t_hw % 256 == 0:
            t_hw //= 2
            n_s = pl.cdiv(HW, t_hw)

    return b_tile, t_hw, n_b, n_s


# ---------------------------------------------------------------------------
# Public wrapper
# ---------------------------------------------------------------------------
def soft_grouping_strategy(q, w1, w2, w3, groups):
    """q: NCHW (B, C_in, H, W); wX: grouped 1x1 conv weights (C_out, C_in/GX, 1, 1)."""
    B, C_in, H, W = q.shape
    C_out = w1.shape[0]
    HW = H * W
    itemsize = jnp.dtype(q.dtype).itemsize

    # Fuse the three grouped convs into one dense (C_out, C_in) matrix (f32 sum,
    # single cast to the activation dtype so the kernel stays bandwidth-optimal).
    w = (_expand_grouped_weight(w1, C_in, groups[0])
         + _expand_grouped_weight(w2, C_in, groups[1])
         + _expand_grouped_weight(w3, C_in, groups[2])).astype(q.dtype)

    # Channel-major flatten (contiguous; no transpose, no extra HBM pass).
    x = q.reshape(B, C_in, HW)

    vmem_limit, tile_budget = _vmem_limits()
    b_tile, t_hw, n_b, n_s = _pick_tiling(B, C_in, C_out, HW, itemsize, tile_budget)

    out = pl.pallas_call(
        sgs_kernel,
        out_shape=jax.ShapeDtypeStruct((B, C_out, HW), q.dtype),
        grid_spec=pltpu.PrefetchScalarGridSpec(
            num_scalar_prefetch=0,
            grid=(n_b, n_s),
            in_specs=[
                # activation slab: (b_tile, C_in, t_hw); contiguous in HBM when n_s == 1
                pl.BlockSpec((b_tile, C_in, t_hw), lambda b, j: (b, 0, j)),
                # fused weight: resident across the whole grid, DMA'd once
                pl.BlockSpec((C_out, C_in), lambda b, j: (0, 0)),
            ],
            out_specs=pl.BlockSpec((b_tile, C_out, t_hw), lambda b, j: (b, 0, j)),
        ),
        compiler_params=pltpu.CompilerParams(
            dimension_semantics=("parallel", "parallel"),
            vmem_limit_bytes=vmem_limit),
    )(x, w)

    # (B, C_out, H*W) -> NCHW (contiguous reshape).
    return out.reshape(B, C_out, H, W)


# ---------------------------------------------------------------------------
# Pure-JAX reference (true grouped 1x1 conv) for the correctness check
# ---------------------------------------------------------------------------
def _grouped_conv_ref(q, w, groups):
    return lax.conv_general_dilated(
        q, w, window_strides=(1, 1), padding="VALID",
        dimension_numbers=("NCHW", "OIHW", "NCHW"),
        feature_group_count=groups)


if __name__ == "__main__":
    # Small shapes consistent with the module: in=out=16 channels, N=(1,2,4) groups.
    B, C_in, C_out, H, W = 2, 16, 16, 16, 16
    N = (1, 2, 4)

    key = jax.random.PRNGKey(0)
    k0, k1, k2, k3 = jax.random.split(key, 4)

    q = jax.random.normal(k0, (B, C_in, H, W), dtype=jnp.float32)

    def init_w(k, groups):
        fan_in = C_in // groups
        std = (2.0 / fan_in) ** 0.5
        return std * jax.random.normal(k, (C_out, C_in // groups, 1, 1),
                                       dtype=jnp.float32)

    w1 = init_w(k1, N[0])
    w2 = init_w(k2, N[1])
    w3 = init_w(k3, N[2])

    out = soft_grouping_strategy(q, w1, w2, w3, N)
    out = jax.block_until_ready(out)

    # Correctness check against true grouped-conv semantics.
    ref = (_grouped_conv_ref(q, w1, N[0])
           + _grouped_conv_ref(q, w2, N[1])
           + _grouped_conv_ref(q, w3, N[2]))
    assert out.shape == (B, C_out, H, W)
    assert jnp.allclose(out, ref, atol=1e-4, rtol=1e-4)

    print("KERNEL_OK")
</pallas_src>

<mosaic_0001>
module attributes {stable_mosaic.version = 11 : i64} {
  func.func @sgs_kernel(%arg0: i32, %arg1: i32, %arg2: memref<2x16x256xf32, #tpu.memory_space<vmem>>, %arg3: memref<16x16xf32, #tpu.memory_space<vmem>>, %arg4: memref<2x16x256xf32, #tpu.memory_space<vmem>>) attributes {dimension_semantics = [#tpu.dimension_semantics<parallel>, #tpu.dimension_semantics<parallel>], iteration_bounds = array<i64: 1, 1>, scalar_prefetch = 0 : i64, scratch_operands = 0 : i64, tpu.core_type = #tpu.core_type<tc>, window_params = [{transform_indices = @transform_0, window_bounds = array<i64: 2, 16, 256>}, {pipeline_mode = #tpu.pipeline_mode<synchronous>, transform_indices = @transform_1, window_bounds = array<i64: 16, 16>}, {transform_indices = @transform_2, window_bounds = array<i64: 2, 16, 256>}]} {
    %c0 = arith.constant 0 : index
    %c0_0 = arith.constant 0 : index
    %0 = vector.load %arg3[%c0, %c0_0] : memref<16x16xf32, #tpu.memory_space<vmem>>, vector<16x16xf32>
    %c0_1 = arith.constant 0 : index
    %c0_2 = arith.constant 0 : index
    %c0_3 = arith.constant 0 : index
    %1 = vector.load %arg2[%c0_1, %c0_2, %c0_3] : memref<2x16x256xf32, #tpu.memory_space<vmem>>, vector<1x16x256xf32>
    %2 = vector.shape_cast %1 : vector<1x16x256xf32> to vector<16x256xf32>
    %cst = arith.constant dense<0.000000e+00> : vector<16x256xf32>
    %3 = tpu.matmul %0, %2, %cst {dimension_numbers = #tpu.dot_dimension_numbers<[1], [0], [0], [1], [0, 0, 1, 1], [], []>} : vector<16x16xf32>, vector<16x256xf32>, vector<16x256xf32> -> vector<16x256xf32>
    %c0_4 = arith.constant 0 : index
    %c0_5 = arith.constant 0 : index
    %c0_6 = arith.constant 0 : index
    %4 = vector.load %arg4[%c0_4, %c0_5, %c0_6] : memref<2x16x256xf32, #tpu.memory_space<vmem>>, vector<1x16x256xf32>
    %5 = vector.shape_cast %4 : vector<1x16x256xf32> to vector<16x256xf32>
    %6 = vector.shape_cast %3 : vector<16x256xf32> to vector<1x16x256xf32>
    tpu.vector_store %arg4[%c0_4, %c0_5, %c0_6], %6 {strides = array<i32>} : memref<2x16x256xf32, #tpu.memory_space<vmem>>, vector<1x16x256xf32>,
    %c1 = arith.constant 1 : index
    %c0_7 = arith.constant 0 : index
    %c0_8 = arith.constant 0 : index
    %7 = vector.load %arg2[%c1, %c0_7, %c0_8] : memref<2x16x256xf32, #tpu.memory_space<vmem>>, vector<1x16x256xf32>
    %8 = vector.shape_cast %7 : vector<1x16x256xf32> to vector<16x256xf32>
    %cst_9 = arith.constant dense<0.000000e+00> : vector<16x256xf32>
    %9 = tpu.matmul %0, %8, %cst_9 {dimension_numbers = #tpu.dot_dimension_numbers<[1], [0], [0], [1], [0, 0, 1, 1], [], []>} : vector<16x16xf32>, vector<16x256xf32>, vector<16x256xf32> -> vector<16x256xf32>
    %c1_10 = arith.constant 1 : index
    %c0_11 = arith.constant 0 : index
    %c0_12 = arith.constant 0 : index
    %10 = vector.load %arg4[%c1_10, %c0_11, %c0_12] : memref<2x16x256xf32, #tpu.memory_space<vmem>>, vector<1x16x256xf32>
    %11 = vector.shape_cast %10 : vector<1x16x256xf32> to vector<16x256xf32>
    %12 = vector.shape_cast %9 : vector<16x256xf32> to vector<1x16x256xf32>
    tpu.vector_store %arg4[%c1_10, %c0_11, %c0_12], %12 {strides = array<i32>} : memref<2x16x256xf32, #tpu.memory_space<vmem>>, vector<1x16x256xf32>,
    return
  }
  func.func @transform_0(%arg0: i32, %arg1: i32) -> (i32, i32, i32) {
    %c0_i32 = arith.constant 0 : i32
    %c0_i32_0 = arith.constant 0 : i32
    return %arg0, %c0_i32, %arg1 : i32, i32, i32
  }
  func.func @transform_1(%arg0: i32, %arg1: i32) -> (i32, i32) {
    %c0_i32 = arith.constant 0 : i32
    %c0_i32_0 = arith.constant 0 : i32
    %c0_i32_1 = arith.constant 0 : i32
    return %c0_i32, %c0_i32_0 : i32, i32
  }
  func.func @transform_2(%arg0: i32, %arg1: i32) -> (i32, i32, i32) {
    %c0_i32 = arith.constant 0 : i32
    %c0_i32_0 = arith.constant 0 : i32
    return %arg0, %c0_i32, %arg1 : i32, i32, i32
  }
}

</mosaic_0001>

<bundles_post_ra>
// kernel: tpu_custom_call.1
= control target key start
LH: loop header
LB: loop body
LE: loop exit
PB: predicated region body
PF: predicated region fallthrough
CT: control target
= control target key end

     0   :  { %7 = vsyncpa [#allocation3], 0  ;;  %s396_s0 = inlined_call_operand.hbm [shape: f32[2,16,256], index: 0, kind: input, shape index: {}]   ;;  %s397_s1 = inlined_call_operand.hbm [shape: f32[16,16], index: 1, kind: input, shape index: {}]   ;;  %s398_s2 = inlined_call_operand.hbm [shape: f32[2,16,256], index: 2, kind: output, shape index: {}]  }
   0x1   :  { %8 = vsyncpa [#allocation6], 0 }
   0x2   :  { %9 = vsyncpa [#allocation4], 0  ;;  %s331_s9 = smov [#allocation2]   ;;  %s259_s13 = scalar_lea.hbm %s396_s0, 1024 }
   0x3   :  { %s15_s10 = sshll.u32 %s331_s9, 4  ;;  %p260_p0 = scmp.ne.s32.totalorder %s396_s0, %s259_s13  ;;  %s16_s10 = int_to_ptr.vmem [resolvable:$true] %s15_s10 }
   0x4   :  { %p263_p1 = scmp.lt.u32.totalorder %s259_s13, %s396_s0 }
   0x6   :  { %p265_p2 = pnand %p263_p1, %p260_p0 }
   0x8   :  { %268 = shalt.err (!%p265_p2)
}
   0x9   :  { %s269_s18 = scalar_lea.vmem %s16_s10, 1024  ;;  %p274_p4 = scmp.lt.s32.totalorder %s16_s10, %s16_s10 }
   0xa   :  { %p270_p3 = scmp.ne.s32.totalorder %s16_s10, %s269_s18  ;;  %p275_p5 = scmp.lt.s32.totalorder %s269_s18, %s269_s18 }
   0xc   :  { %p276_p6 = por %p275_p5, %p274_p4 }
   0xe   :  { %p277_p7 = pnand %p276_p6, %p270_p3 }
  0x10   :  { %280 = shalt.err (!%p277_p7)
}
  0x11   :  { %s332_s19 = smov 256   ;;  %s333_s20 = smov 16  }
  0x12   :  { %21 = dma.hbm_to_vmem [thread:$0]  %s396_s0, 1024, %s16_s10, [#allocation3], %s332_s19, %s332_s19, %s333_s20  }
  0x13   :  { %s334_s23 = smov [#allocation5]   ;;  %s281_s27 = scalar_lea.hbm %s397_s1, 256 }
  0x14   :  { %s27_s24 = sshll.u32 %s334_s23, 4  ;;  %p282_p8 = scmp.ne.s32.totalorder %s397_s1, %s281_s27  ;;  %s28_s24 = int_to_ptr.vmem [resolvable:$true] %s27_s24 }
  0x15   :  { %p285_p9 = scmp.lt.u32.totalorder %s281_s27, %s397_s1 }
  0x17   :  { %p287_p10 = pnand %p285_p9, %p282_p8 }
  0x19   :  { %290 = shalt.err (!%p287_p10)
}
  0x1a   :  { %s291_s4 = scalar_lea.vmem %s28_s24, 256  ;;  %p296_p12 = scmp.lt.s32.totalorder %s28_s24, %s28_s24 }
  0x1b   :  { %p292_p11 = scmp.ne.s32.totalorder %s28_s24, %s291_s4  ;;  %p297_p13 = scmp.lt.s32.totalorder %s291_s4, %s291_s4 }
  0x1d   :  { %p298_p0 = por %p297_p13, %p296_p12 }
  0x1f   :  { %p299_p1 = pnand %p298_p0, %p292_p11 }
  0x21   :  { %302 = shalt.err (!%p299_p1)
}
  0x22   :  { %s335_s0 = smov 128   ;;  %s336_s5 = smov 8  }
  0x23   :  { %33 = dma.hbm_to_vmem [thread:$0]  %s397_s1, 256, %s28_s24, [#allocation6], %s335_s0, %s335_s0, %s336_s5  }
  0x24   :  { %325 = dma.done.wait [#allocation3], 1024  }
  0x25   :  { %326 = vsyncadd [#allocation3], 4294966272 }
  0x26   :  { %327 = dma.done.wait [#allocation6], 256  }
  0x27   :  { %328 = vsyncadd [#allocation6], 4294967040  ;;  %v337_v0 = vmov 0.0   ;;  %v43_v1 = vld [vmem:[#allocation2 + $0x8] sm:$0xff]  ;;  %v45_v2 = vld [vmem:[#allocation2 + $0x18] sm:$0xff]  ;;  %vm46_vm0 = vcmask 130048  }
  0x28   :  { %117 = vmatprep.mubr.f32.mxu0 %v337_v0  ;;  %203 = vmatprep.mubr.f32.mxu1 %v337_v0  ;;  %v136_v3 = vld [vmem:[#allocation2 + $0x28] sm:$0xff]  ;;  %v243_v4 = vpack.c.bf16 %v45_v2, %v43_v1  ;;  %v138_v5 = vld [vmem:[#allocation2 + $0x38] sm:$0xff]  ;;  %v42_v6 = vld [vmem:[#allocation2] sm:$0xff]  ;;  %s338_s1 = smov [#allocation7]  }
  0x29   :  { %v44_v7 = vld [vmem:[#allocation2 + $0x10] sm:$0xff]  ;;  %v247_v8 = vpack.c.bf16 %v138_v5, %v136_v3  ;;  %v135_v10 = vld [vmem:[#allocation2 + $0x20] sm:$0xff]  ;;  %v41_v14 = vld [vmem:[#allocation5 + $0x8] sm:$0xff]  ;;  %s226_s8 = sshll.u32 %s338_s1, 4  ;;  %s227_s8 = int_to_ptr.vmem [resolvable:$true] %s226_s8 }
  0x2a   :  { %v245_v9 = vpack.c.bf16 %v44_v7, %v42_v6  ;;  %v137_v11 = vld [vmem:[#allocation2 + $0x30] sm:$0xff]  ;;  %244 = vmatprep.subr.bf16.mxu0 %v243_v4  ;;  %v40_v13 = vld [vmem:[#allocation5] sm:$0xff]  ;;  %s303_s9 = scalar_lea.vmem %s227_s8, 1024  ;;  %p308_p3 = scmp.lt.s32.totalorder %s227_s8, %s227_s8 }
  0x2b   :  { %v249_v12 = vpack.c.bf16 %v137_v11, %v135_v10  ;;  %248 = vmatprep.subr.bf16.mxu1 %v247_v8  ;;  %p304_p2 = scmp.ne.s32.totalorder %s227_s8, %s303_s9  ;;  %p309_p4 = scmp.lt.s32.totalorder %s303_s9, %s303_s9 }
  0x2c   :  { %246 = vmatpush1.bf16.msra.mxu0 %v245_v9 }
  0x2d   :  { %250 = vmatpush1.bf16.msra.mxu1 %v249_v12  ;;  %p310_p5 = por %p309_p4, %p308_p3 }
  0x2f   :  { %239 = vmatmul.mubr.msk.f32.vlgmr.msra.gmra.mrb[0].mxu0 %vm46_vm0, %v40_v13  ;;  %p311_p6 = pnand %p310_p5, %p304_p2 }
  0x30   :  { %241 = vmatmul.mubr.msk.f32.vlgmr.msra.gmra.mrb[0].mxu1 %vm46_vm0, %v40_v13  ;;  %123 = vmatprep.mubr.f32.mxu0 %v337_v0 }
  0x31   :  { %209 = vmatprep.mubr.f32.mxu1 %v337_v0 }
  0x33   :  { %240 = vmatmul.mubr.msk.f32.gmra.mrb[2].mxu0 %vm46_vm0, %v41_v14 }
  0x34   :  { %242 = vmatmul.mubr.msk.f32.gmra.mrb[2].mxu1 %vm46_vm0, %v41_v14 }
 0x102   :  { %v119_v15 = vpop.f32.mrb[0].mxu0 }
 0x103   :  { %130 = vst [vmem:[#allocation7] sm:$0xff] %v119_v15  ;;  %v205_v16 = vpop.f32.mrb[0].mxu1  ;;  %v121_v17 = vpop.f32.mrb[1].mxu0 }
 0x104   :  { %217 = vst [vmem:[#allocation7 + $0x20] sm:$0xff] %v205_v16  ;;  %131 = vst [vmem:[#allocation7 + $0x8] sm:$0xff] %v121_v17  ;;  %v207_v18 = vpop.f32.mrb[1].mxu1 }
 0x105   :  { %218 = vst [vmem:[#allocation7 + $0x28] sm:$0xff] %v207_v18 }
 0x106   :  { %v125_v19 = vpop.f32.mrb[2].mxu0 }
 0x107   :  { %132 = vst [vmem:[#allocation7 + $0x10] sm:$0xff] %v125_v19  ;;  %v211_v20 = vpop.f32.mrb[2].mxu1  ;;  %v127_v21 = vpop.f32.mrb[3].mxu0 }
 0x108   :  { %219 = vst [vmem:[#allocation7 + $0x30] sm:$0xff] %v211_v20  ;;  %133 = vst [vmem:[#allocation7 + $0x18] sm:$0xff] %v127_v21  ;;  %v213_v22 = vpop.f32.mrb[3].mxu1 }
 0x109   :  { %220 = vst [vmem:[#allocation7 + $0x38] sm:$0xff] %v213_v22 }
 0x10a   :  { %314 = shalt.err (!%p311_p6)
}
 0x10b   :  { %s315_s12 = scalar_lea.hbm %s398_s2, 1024 }
 0x10c   :  { %p316_p7 = scmp.ne.s32.totalorder %s398_s2, %s315_s12  ;;  %p319_p8 = scmp.lt.u32.totalorder %s315_s12, %s398_s2 }
 0x10e   :  { %p321_p9 = pnand %p319_p8, %p316_p7 }
 0x110   :  { %324 = shalt.err (!%p321_p9)
}
 0x111   :  { %232 = dma.vmem_to_hbm [thread:$0]  %s227_s8, 1024, %s398_s2, [#allocation4], %s332_s19, %s332_s19, %s333_s20  }
 0x112   :  { %329 = dma.done.wait [#allocation4], 1024  }
 0x113   :  { %330 = vsyncadd [#allocation4], 4294966272 }
 0x114   :  { %236 = vsyncpa [#allocation3], 1 }
 0x115   :  { %237 = vsyncpa [#allocation6], 1 }
 0x116   :  { %238 = vsyncpa [#allocation4], 1 }

</bundles_post_ra>
